<compile_context>
chip_gen: v5e
topology: v5e:2x2
jax: 0.10.0
libtpu: 0.0.40
codegen_flags: <defaults>
</compile_context>

<pallas_src>
import functools

import jax
import jax.numpy as jnp
from jax import lax
from jax.experimental import pallas as pl
from jax.experimental.pallas import tpu as pltpu

GAMMA = 1.5                      # module defaults
ALPHA = 0.25
LANES = 128
CHUNK_ROWS = 256                 # 256x128 f32 = 128 KiB per live intermediate
TILE_BYTES = 2 * 1024 * 1024     # per input per pipeline buffer

# Sentinel padding for the lane-ragged tail (n % 128 != 0): focal loss of
# (pred=+40, true=1) is ~1e-23 in f32, i.e. numerically zero contribution.
_PAD_PRED = 40.0
_PAD_TRUE = 1.0


def _elementwise_focal(x, y, gamma, alpha):
    """Per-element focal loss in f32 (x = logits, y = targets)."""
    # Stable BCE-with-logits; exp(-|x|) is reused below for the sigmoid.
    e = jnp.exp(-jnp.abs(x))                          # EUP exp (shared)
    bce = jnp.maximum(x, 0.0) - x * y + jnp.log1p(e)
    r = pl.reciprocal(1.0 + e, approx=True)           # EUP vrcp, no f32 divide
    p = jnp.where(x >= 0.0, r, e * r)                 # sigmoid(x)
    # t = 1 - p_t = 1 - (y*p + (1-y)*(1-p)) = p + y*(1 - 2p)    (fewer VALU ops)
    t = p + y * (1.0 - 2.0 * p)
    # alpha_factor = y*alpha + (1-y)*(1-alpha) = (1-alpha) + y*(2*alpha - 1)
    af = (1.0 - alpha) + y * (2.0 * alpha - 1.0)
    if gamma == 1.5:                                  # default: t*sqrt(t), no pow
        mod = t * jnp.sqrt(t)
    elif gamma == 2.0:
        mod = t * t
    elif gamma == 1.0:
        mod = t
    else:
        mod = jnp.power(t, jnp.float32(gamma))
    return bce * af * mod


def _partial_8x128(loss):
    """(r,128) f32 -> (8,128) partial sums with pure VPU adds (no XLU)."""
    r = loss.shape[0]
    if r % 8 == 0:
        return jnp.sum(loss.reshape(r // 8, 8, LANES), axis=0)
    # Tiny/unaligned single-block case: put the column sums in sublane 0.
    s = jnp.sum(loss, axis=0, keepdims=True)              # (1, 128)
    row0 = lax.broadcasted_iota(jnp.int32, (8, 1), 0) == 0
    return jnp.where(row0, s, jnp.float32(0.0))


def _focal_loss_kernel(pred_ref, true_ref, out_ref, *, gamma, alpha,
                       chunk_rows, num_chunks, mask_info):
    """One grid step: sum focal loss over this block into an (8,128) partial."""

    def block_partial(n_chunks, valid_rows):
        # valid_rows is a *static* row count (only the last grid step is
        # masked), or None for the branch-free fully-valid fast path.
        if n_chunks == 1:
            x = pred_ref[:chunk_rows, :].astype(jnp.float32)
            y = true_ref[:chunk_rows, :].astype(jnp.float32)
            loss = _elementwise_focal(x, y, gamma, alpha)
            if valid_rows is not None and valid_rows < chunk_rows:
                row_idx = lax.broadcasted_iota(jnp.int32, (chunk_rows, 1), 0)
                loss = jnp.where(row_idx < valid_rows, loss, 0.0)
            return _partial_8x128(loss)

        # Multi-chunk: fori_loop accumulating into one (8,128) f32 vreg,
        # bounding live ranges (big-tile intermediates never spill to VMEM).
        row_idx = (lax.broadcasted_iota(jnp.int32, (chunk_rows, 1), 0)
                   if valid_rows is not None else None)   # hoisted out of loop

        def body(c, acc):
            start = pl.multiple_of(c * chunk_rows, chunk_rows)
            x = pred_ref[pl.ds(start, chunk_rows), :].astype(jnp.float32)
            y = true_ref[pl.ds(start, chunk_rows), :].astype(jnp.float32)
            loss = _elementwise_focal(x, y, gamma, alpha)
            if valid_rows is not None:
                loss = jnp.where(row_idx < valid_rows - c * chunk_rows, loss, 0.0)
            return acc + _partial_8x128(loss)

        return lax.fori_loop(0, n_chunks, body,
                             jnp.zeros((8, LANES), jnp.float32), unroll=2)

    if mask_info is None:
        out_ref[...] = block_partial(num_chunks, None)
    else:
        last_idx, last_valid_rows = mask_info              # static python ints
        masked_chunks = -(-last_valid_rows // chunk_rows)  # only chunks with data
        @pl.when(pl.program_id(0) == last_idx)
        def _():
            out_ref[...] = block_partial(masked_chunks, last_valid_rows)
        @pl.when(pl.program_id(0) != last_idx)
        def _():
            out_ref[...] = block_partial(num_chunks, None)


def focal_loss(pred, true, gamma=GAMMA, alpha=ALPHA, reduction="mean"):
    """Focal loss around BCEWithLogitsLoss; reduction 'mean' (default) or 'sum'."""
    assert pred.shape == true.shape
    if reduction not in ("mean", "sum"):
        # TODO(synk): reduction='none' (elementwise output) not implemented.
        raise NotImplementedError("focal_loss supports 'mean' and 'sum' only")

    n = pred.size
    rows = pl.cdiv(n, LANES)
    n128 = rows * LANES

    # Keep inputs in their HBM dtype; the flatten is a free (bitcast) reshape.
    pred_flat = pred.reshape(-1)
    true_flat = true.reshape(-1)
    if n128 != n:
        # TODO(synk): lane-ragged tail (n % 128 != 0) still pays one O(n) pad
        # copy; a copy-free path would need a 1-D / manual-DMA layout.
        pad = n128 - n
        pred_flat = jnp.pad(pred_flat, (0, pad),
                            constant_values=jnp.asarray(_PAD_PRED, pred.dtype))
        true_flat = jnp.pad(true_flat, (0, pad),
                            constant_values=jnp.asarray(_PAD_TRUE, true.dtype))
    pred2d = pred_flat.reshape(rows, LANES)
    true2d = true_flat.reshape(rows, LANES)

    # Dtype-aware tile sizing: ~TILE_BYTES per input per pipeline buffer.
    itemsize = jnp.dtype(pred.dtype).itemsize
    budget_rows = max(CHUNK_ROWS,
                      (TILE_BYTES // (LANES * itemsize)) // CHUNK_ROWS * CHUNK_ROWS)
    if rows <= CHUNK_ROWS:
        # Single full-extent block (always a legal BlockSpec); no masking.
        tile_rows, chunk_rows, num_blocks, mask_info = rows, rows, 1, None
    else:
        chunk_rows = CHUNK_ROWS
        tile_rows = min(budget_rows, (rows // CHUNK_ROWS) * CHUNK_ROWS)
        if pl.cdiv(rows, tile_rows) < 2:
            # Keep >= 2 grid steps so v7x can split work across both TensorCores.
            tile_rows = max(CHUNK_ROWS,
                            pl.cdiv(pl.cdiv(rows, 2), CHUNK_ROWS) * CHUNK_ROWS)
        num_blocks = pl.cdiv(rows, tile_rows)
        last_rows = rows - (num_blocks - 1) * tile_rows
        # Mask only the (partial) last block; all other steps stay branch-free.
        mask_info = None if last_rows == tile_rows else (num_blocks - 1, last_rows)
    num_chunks = tile_rows // chunk_rows

    kernel = functools.partial(_focal_loss_kernel, gamma=gamma, alpha=alpha,
                               chunk_rows=chunk_rows, num_chunks=num_chunks,
                               mask_info=mask_info)

    partials = pl.pallas_call(
        kernel,
        out_shape=jax.ShapeDtypeStruct((num_blocks * 8, LANES), jnp.float32),
        grid_spec=pltpu.PrefetchScalarGridSpec(
            num_scalar_prefetch=0,
            grid=(num_blocks,),
            in_specs=[
                # TODO(synk): sweep pipeline_mode=pl.Buffered(3) if a trace
                # shows exposed DMA at step boundaries (most likely on v7x).
                pl.BlockSpec((tile_rows, LANES), lambda i: (i, 0)),
                pl.BlockSpec((tile_rows, LANES), lambda i: (i, 0)),
            ],
            out_specs=pl.BlockSpec((8, LANES), lambda i: (i, 0)),
        ),
        # Per-block partial sums -> no cross-step state -> safely "parallel"
        # (lets v7x split the grid across both TensorCores).  VMEM use is
        # ~2 inputs x 2 buffers x <=2 MiB + ~1 MiB chunk temps, well under
        # the limit on every generation (v5e default 16 MiB included).
        compiler_params=pltpu.CompilerParams(
            dimension_semantics=("parallel",),
            vmem_limit_bytes=32 * 1024 * 1024),
    )(pred2d, true2d)

    total = jnp.sum(partials)
    if reduction == "sum":
        return total.astype(pred.dtype)
    return (total / jnp.float32(n)).astype(pred.dtype)


def _reference(pred, true, gamma=GAMMA, alpha=ALPHA):
    x = pred.astype(jnp.float32)
    y = true.astype(jnp.float32)
    bce = jnp.maximum(x, 0.0) - x * y + jnp.log1p(jnp.exp(-jnp.abs(x)))
    p = jax.nn.sigmoid(x)
    p_t = y * p + (1.0 - y) * (1.0 - p)
    alpha_factor = y * alpha + (1.0 - y) * (1.0 - alpha)
    mod = (1.0 - p_t) ** gamma
    return jnp.mean(bce * alpha_factor * mod)


if __name__ == "__main__":
    key = jax.random.PRNGKey(0)
    k1, k2, k3, k4, k5, k6 = jax.random.split(key, 6)

    # (1) Lane-aligned small case: 2*4*16*16 = 2048 = 16 rows -> single
    #     full-extent block, no padding, no masking.
    shape = (2, 4, 16, 16)  # NCHW
    pred = jax.random.normal(k1, shape, dtype=jnp.float32)
    true = (jax.random.uniform(k2, shape) > 0.5).astype(jnp.float32)
    out = jax.block_until_ready(focal_loss(pred, true))
    ref = _reference(pred, true)
    assert jnp.allclose(out, ref, atol=2e-3, rtol=2e-3), (out, ref)

    # (2) Lane-ragged case: 2*3*5*7 = 210 elements (sentinel tail-pad path).
    shape2 = (2, 3, 5, 7)
    pred2 = jax.random.normal(k3, shape2, dtype=jnp.float32)
    true2 = (jax.random.uniform(k4, shape2) > 0.5).astype(jnp.float32)
    out2 = jax.block_until_ready(focal_loss(pred2, true2))
    ref2 = _reference(pred2, true2)
    assert jnp.allclose(out2, ref2, atol=2e-3, rtol=2e-3), (out2, ref2)

    # (3) Multi-block case: 2*4*96*96 = 73728 = 576 rows -> 2 grid steps,
    #     chunked fori_loop + masked partial last block (no padding at all).
    shape3 = (2, 4, 96, 96)
    pred3 = jax.random.normal(k5, shape3, dtype=jnp.float32)
    true3 = (jax.random.uniform(k6, shape3) > 0.5).astype(jnp.float32)
    out3 = jax.block_until_ready(focal_loss(pred3, true3))
    ref3 = _reference(pred3, true3)
    assert jnp.allclose(out3, ref3, atol=2e-3, rtol=2e-3), (out3, ref3)

    print("KERNEL_OK")
</pallas_src>

<mosaic_0001>
module attributes {stable_mosaic.version = 11 : i64} {
  func.func @_focal_loss_kernel(%arg0: i32, %arg1: memref<16x128xf32, #tpu.memory_space<vmem>>, %arg2: memref<16x128xf32, #tpu.memory_space<vmem>>, %arg3: memref<8x128xf32, #tpu.memory_space<vmem>>) attributes {dimension_semantics = [#tpu.dimension_semantics<parallel>], iteration_bounds = array<i64: 1>, scalar_prefetch = 0 : i64, scratch_operands = 0 : i64, tpu.core_type = #tpu.core_type<tc>, window_params = [{transform_indices = @transform_0, window_bounds = array<i64: 16, 128>}, {transform_indices = @transform_1, window_bounds = array<i64: 16, 128>}, {transform_indices = @transform_2, window_bounds = array<i64: 8, 128>}]} {
    %c0 = arith.constant 0 : index
    %c0_0 = arith.constant 0 : index
    %0 = vector.load %arg1[%c0, %c0_0] : memref<16x128xf32, #tpu.memory_space<vmem>>, vector<16x128xf32>
    %c0_1 = arith.constant 0 : index
    %c0_2 = arith.constant 0 : index
    %1 = vector.load %arg2[%c0_1, %c0_2] : memref<16x128xf32, #tpu.memory_space<vmem>>, vector<16x128xf32>
    %2 = math.absf %0 : vector<16x128xf32>
    %cst = arith.constant 0.000000e+00 : f32
    %3 = vector.broadcast %cst : f32 to vector<16x128xf32>
    %4 = arith.subf %3, %2 : vector<16x128xf32>
    %5 = math.exp %4 : vector<16x128xf32>
    %cst_3 = arith.constant 0.000000e+00 : f32
    %6 = vector.broadcast %cst_3 : f32 to vector<16x128xf32>
    %7 = arith.maximumf %0, %6 : vector<16x128xf32>
    %8 = arith.mulf %0, %1 : vector<16x128xf32>
    %9 = arith.subf %7, %8 : vector<16x128xf32>
    %10 = math.log1p %5 : vector<16x128xf32>
    %11 = arith.addf %9, %10 : vector<16x128xf32>
    %cst_4 = arith.constant 1.000000e+00 : f32
    %12 = vector.broadcast %cst_4 : f32 to vector<16x128xf32>
    %13 = arith.addf %12, %5 : vector<16x128xf32>
    %14 = tpu.reciprocal %13 {approx = true} : vector<16x128xf32> -> vector<16x128xf32>
    %cst_5 = arith.constant 0.000000e+00 : f32
    %15 = vector.broadcast %cst_5 : f32 to vector<16x128xf32>
    %16 = arith.cmpf oge, %0, %15 : vector<16x128xf32>
    %17 = arith.mulf %5, %14 : vector<16x128xf32>
    %18 = arith.select %16, %14, %17 : vector<16x128xi1>, vector<16x128xf32>
    %cst_6 = arith.constant 2.000000e+00 : f32
    %19 = vector.broadcast %cst_6 : f32 to vector<16x128xf32>
    %20 = arith.mulf %19, %18 : vector<16x128xf32>
    %cst_7 = arith.constant 1.000000e+00 : f32
    %21 = vector.broadcast %cst_7 : f32 to vector<16x128xf32>
    %22 = arith.subf %21, %20 : vector<16x128xf32>
    %23 = arith.mulf %1, %22 : vector<16x128xf32>
    %24 = arith.addf %18, %23 : vector<16x128xf32>
    %cst_8 = arith.constant -5.000000e-01 : f32
    %25 = vector.broadcast %cst_8 : f32 to vector<16x128xf32>
    %26 = arith.mulf %1, %25 : vector<16x128xf32>
    %cst_9 = arith.constant 7.500000e-01 : f32
    %27 = vector.broadcast %cst_9 : f32 to vector<16x128xf32>
    %28 = arith.addf %27, %26 : vector<16x128xf32>
    %29 = math.sqrt %24 : vector<16x128xf32>
    %30 = arith.mulf %24, %29 : vector<16x128xf32>
    %31 = arith.mulf %11, %28 : vector<16x128xf32>
    %32 = arith.mulf %31, %30 : vector<16x128xf32>
    %33 = vector.shape_cast %32 : vector<16x128xf32> to vector<2x8x128xf32>
    %cst_10 = arith.constant dense<0.000000e+00> : vector<8x128xf32>
    %34 = vector.multi_reduction <add>, %33, %cst_10 [0] : vector<2x8x128xf32> to vector<8x128xf32>
    %c0_11 = arith.constant 0 : index
    %c0_12 = arith.constant 0 : index
    %35 = vector.load %arg3[%c0_11, %c0_12] : memref<8x128xf32, #tpu.memory_space<vmem>>, vector<8x128xf32>
    tpu.vector_store %arg3[%c0_11, %c0_12], %34 {strides = array<i32>} : memref<8x128xf32, #tpu.memory_space<vmem>>, vector<8x128xf32>,
    return
  }
  func.func @transform_0(%arg0: i32) -> (i32, i32) {
    %c0_i32 = arith.constant 0 : i32
    %c0_i32_0 = arith.constant 0 : i32
    return %arg0, %c0_i32 : i32, i32
  }
  func.func @transform_1(%arg0: i32) -> (i32, i32) {
    %c0_i32 = arith.constant 0 : i32
    %c0_i32_0 = arith.constant 0 : i32
    return %arg0, %c0_i32 : i32, i32
  }
  func.func @transform_2(%arg0: i32) -> (i32, i32) {
    %c0_i32 = arith.constant 0 : i32
    %c0_i32_0 = arith.constant 0 : i32
    return %arg0, %c0_i32 : i32, i32
  }
}

</mosaic_0001>

<bundles_post_ra>
// kernel: tpu_custom_call.1
= control target key start
LH: loop header
LB: loop body
LE: loop exit
PB: predicated region body
PF: predicated region fallthrough
CT: control target
= control target key end

     0   :  { %7 = vsyncpa [#allocation3], 0  ;;  %s306_s0 = inlined_call_operand.hbm [shape: f32[16,128], index: 0, kind: input, shape index: {}]   ;;  %s307_s1 = inlined_call_operand.hbm [shape: f32[16,128], index: 1, kind: input, shape index: {}]   ;;  %s308_s2 = inlined_call_operand.hbm [shape: f32[8,128], index: 2, kind: output, shape index: {}]  }
   0x1   :  { %8 = vsyncpa [#allocation6], 0 }
   0x2   :  { %9 = vsyncpa [#allocation4], 0  ;;  %s14_s11 = sshll.u32 %s306_s0, 4  ;;  %s253_s12 = smov [#allocation2]   ;;  %s15_s11 = int_to_ptr.hbm [resolvable:$true] %s14_s11 }
   0x3   :  { %s16_s13 = sshll.u32 %s253_s12, 4  ;;  %s27_s16 = sshll.u32 %s307_s1, 4  ;;  %s17_s13 = int_to_ptr.vmem [resolvable:$true] %s16_s13  ;;  %s28_s16 = int_to_ptr.hbm [resolvable:$true] %s27_s16 }
   0x4   :  { %s254_s17 = smov 128   ;;  %s255_s18 = smov 8  }
   0x5   :  { %22 = dma.hbm_to_vmem [thread:$0]  %s15_s11, 256, %s17_s13, [#allocation3], %s254_s17, %s254_s17, %s255_s18  }
   0x6   :  { %s256_s19 = smov [#allocation5]  }
   0x7   :  { %s29_s20 = sshll.u32 %s256_s19, 4  ;;  %s30_s20 = int_to_ptr.vmem [resolvable:$true] %s29_s20 }
   0x8   :  { %35 = dma.hbm_to_vmem [thread:$0]  %s28_s16, 256, %s30_s20, [#allocation6], %s254_s17, %s254_s17, %s255_s18  }
   0x9   :  { %247 = dma.done.wait [#allocation3], 256  }
   0xa   :  { %248 = vsyncadd [#allocation3], 4294967040 }
   0xb   :  { %249 = dma.done.wait [#allocation6], 256  }
   0xc   :  { %250 = vsyncadd [#allocation6], 4294967040  ;;  %v279_v0 = vld [vmem:[#allocation2] sm:$0xff]  ;;  %v281_v1 = vld [vmem:[#allocation2 + $0x8] sm:$0xff]  ;;  %s257_s0 = smov [#allocation7]   ;;  %s143_s23 = sshll.u32 %s308_s2, 4  ;;  %s144_s23 = int_to_ptr.hbm [resolvable:$true] %s143_s23 }
   0xd   :  { %v48_v2 = vand.u32 2147483647, %v279_v0  ;;  %v49_v3 = vand.u32 2147483647, %v281_v1  ;;  %vm86_vm0 = vcmp.ge.f32.partialorder %v279_v0, 0.0  ;;  %vm87_vm1 = vcmp.ge.f32.partialorder %v281_v1, 0.0 }
   0xe   :  { %v46_v19 = vld [vmem:[#allocation5] sm:$0xff]  ;;  %v47_v21 = vld [vmem:[#allocation5 + $0x8] sm:$0xff]  ;;  %v56_v38 = vmax.f32 %v279_v0, 0.0  ;;  %v57_v39 = vmax.f32 %v281_v1, 0.0  ;;  %s141_s1 = sshll.u32 %s257_s0, 4  ;;  %s142_s1 = int_to_ptr.vmem [resolvable:$true] %s141_s1 }
   0xf   :  { %v50_v4 = vsub.f32 0.0, %v48_v2  ;;  %v51_v5 = vsub.f32 0.0, %v49_v3  ;;  %v58_v40 = vmul.f32 %v46_v19, %v279_v0  ;;  %v59_v42 = vmul.f32 %v47_v21, %v281_v1 }
  0x10   :  { %v100_v53 = vmul.f32 -0.5, %v46_v19  ;;  %v101_v54 = vmul.f32 -0.5, %v47_v21 }
  0x11   :  { %v52_v6 = vmul.f32 1.442695, %v50_v4  ;;  %v54_v7 = vmul.f32 1.442695, %v51_v5  ;;  %v60_v52 = vsub.f32 %v56_v38, %v58_v40  ;;  %v61_v56 = vsub.f32 %v57_v39, %v59_v42 }
  0x12   :  { %v102_v63 = vadd.f32 0.75, %v100_v53  ;;  %v103_v0 = vadd.f32 0.75, %v101_v54 }
  0x13   :  { %159 = vpow2.f32 %v52_v6 }
  0x14   :  { %161 = vpow2.f32 %v54_v7 }
  0x19   :  { %v160_v8 = vpop.eup %159 }
  0x1a   :  { %v162_v9 = vpop.eup %161  ;;  %v62_v10 = vadd.f32 1.0, %v160_v8  ;;  %v65_v28 = vmul.f32 -0.5, %v160_v8  ;;  %v68_v33 = vand.u32 2147483647, %v160_v8 }
  0x1b   :  { %v71_v11 = vadd.f32 1.0, %v162_v9  ;;  %v74_v29 = vmul.f32 -0.5, %v162_v9  ;;  %v77_v36 = vand.u32 2147483647, %v162_v9 }
  0x1c   :  { %163 = vrcp.f32 %v62_v10  ;;  %v66_v31 = vadd.f32 1.0, %v65_v28  ;;  %vm291_vm2 = vcmp.lt.f32.partialorder %v68_v33, 0.0004427343 }
  0x1d   :  { %165 = vrcp.f32 %v71_v11  ;;  %v75_v34 = vadd.f32 1.0, %v74_v29  ;;  %vm295_vm3 = vcmp.lt.f32.partialorder %v77_v36, 0.0004427343 }
  0x1e   :  { %167 = vlog2.f32 %v62_v10  ;;  %v67_v44 = vmul.f32 %v160_v8, %v66_v31 }
  0x1f   :  { %169 = vlog2.f32 %v71_v11  ;;  %v76_v48 = vmul.f32 %v162_v9, %v75_v34 }
  0x22   :  { %v164_v12 = vpop.eup %163 }
  0x23   :  { %v166_v13 = vpop.eup %165  ;;  %v88_v14 = vmul.f32 %v164_v12, %v160_v8 }
  0x24   :  { %v89_v15 = vmul.f32 %v166_v13, %v162_v9  ;;  %v168_v30 = vpop.eup %167 }
  0x25   :  { %v90_v16 = vsel %vm86_vm0, %v164_v12, %v88_v14  ;;  %v170_v32 = vpop.eup %169  ;;  %v64_v43 = vmul.f32 0.6931472, %v168_v30 }
  0x26   :  { %v91_v17 = vsel %vm87_vm1, %v166_v13, %v89_v15  ;;  %v92_v18 = vmul.f32 2.0, %v90_v16  ;;  %v73_v47 = vmul.f32 0.6931472, %v170_v32 }
  0x27   :  { %v93_v20 = vmul.f32 2.0, %v91_v17  ;;  %v70_v57 = vsel %vm291_vm2, %v67_v44, %v64_v43 }
  0x28   :  { %v94_v22 = vsub.f32 1.0, %v92_v18  ;;  %v79_v59 = vsel %vm295_vm3, %v76_v48, %v73_v47  ;;  %v80_v62 = vadd.f32 %v70_v57, %v60_v52 }
  0x29   :  { %v95_v23 = vsub.f32 1.0, %v93_v20  ;;  %v81_v2 = vadd.f32 %v79_v59, %v61_v56 }
  0x2a   :  { %v96_v24 = vmul.f32 %v94_v22, %v46_v19  ;;  %v130_v9 = vmul.f32 %v102_v63, %v80_v62 }
  0x2b   :  { %v97_v25 = vmul.f32 %v95_v23, %v47_v21  ;;  %v131_v12 = vmul.f32 %v103_v0, %v81_v2 }
  0x2c   :  { %v98_v26 = vadd.f32 %v96_v24, %v90_v16 }
  0x2d   :  { %v99_v27 = vadd.f32 %v97_v25, %v91_v17 }
  0x2e   :  { %171 = vrsqrt.f32 %v98_v26  ;;  %vm111_vm4 = vcmp.eq.f32.partialorder %v98_v26, inf  ;;  %v114_v3 = vand.u32 2147483648, %v98_v26  ;;  %vm113_vm5 = vcmp.eq.f32.partialorder %v98_v26, 0.0 }
  0x2f   :  { %173 = vrsqrt.f32 %v99_v27  ;;  %vm123_vm6 = vcmp.eq.f32.partialorder %v99_v27, inf  ;;  %v126_v6 = vand.u32 2147483648, %v99_v27  ;;  %vm125_vm7 = vcmp.eq.f32.partialorder %v99_v27, 0.0 }
  0x34   :  { %v172_v35 = vpop.eup %171 }
  0x35   :  { %v174_v37 = vpop.eup %173  ;;  %v105_v41 = vmul.f32 %v172_v35, %v98_v26 }
  0x36   :  { %v117_v45 = vmul.f32 %v174_v37, %v99_v27 }
  0x37   :  { %v106_v49 = vmul.f32 %v172_v35, %v105_v41 }
  0x38   :  { %v118_v51 = vmul.f32 %v174_v37, %v117_v45 }
  0x39   :  { %v107_v55 = vmul.f32 0.5, %v106_v49 }
  0x3a   :  { %v119_v58 = vmul.f32 0.5, %v118_v51 }
  0x3b   :  { %v108_v60 = vsub.f32 1.5, %v107_v55 }
  0x3c   :  { %v120_v61 = vsub.f32 1.5, %v119_v58 }
  0x3d   :  { %v109_v1 = vmul.f32 %v172_v35, %v108_v60 }
  0x3e   :  { %v121_v4 = vmul.f32 %v174_v37, %v120_v61 }
  0x3f   :  { %v110_v5 = vmul.f32 %v109_v1, %v98_v26 }
  0x40   :  { %v122_v7 = vmul.f32 %v121_v4, %v99_v27 }
  0x41   :  { %v112_v8 = vsel %vm111_vm4, %v98_v26, %v110_v5 }
  0x42   :  { %v115_v10 = vsel %vm113_vm5, %v114_v3, %v112_v8  ;;  %v124_v11 = vsel %vm123_vm6, %v99_v27, %v122_v7 }
  0x43   :  { %v127_v13 = vsel %vm125_vm7, %v126_v6, %v124_v11  ;;  %v128_v14 = vmul.f32 %v115_v10, %v98_v26 }
  0x44   :  { %v129_v15 = vmul.f32 %v127_v13, %v99_v27 }
  0x45   :  { %v132_v16 = vmul.f32 %v130_v9, %v128_v14 }
  0x46   :  { %v133_v17 = vmul.f32 %v131_v12, %v129_v15 }
  0x48   :  { %v134_v18 = vadd.f32 %v133_v17, %v132_v16 }
  0x4a   :  { %135 = vst [vmem:[#allocation7] sm:$0xff] %v134_v18 }
  0x4b   :  { %146 = dma.vmem_to_hbm [thread:$0]  %s142_s1, 128, %s144_s23, [#allocation4]  }
  0x4c   :  { %251 = dma.done.wait [#allocation4], 128  }
  0x4d   :  { %252 = vsyncadd [#allocation4], 4294967168 }
  0x4e   :  { %151 = vsyncpa [#allocation3], 1 }
  0x4f   :  { %152 = vsyncpa [#allocation6], 1 }
  0x50   :  { %153 = vsyncpa [#allocation4], 1 }

</bundles_post_ra>
